<compile_context>
chip_gen: v6e
topology: v6e:2x2x1
jax: 0.10.0
libtpu: 0.0.40
codegen_flags: <defaults>
</compile_context>

<pallas_src>
import functools

import jax
import jax.numpy as jnp
from jax.experimental import pallas as pl
from jax.experimental.pallas import tpu as pltpu  # noqa: F401  (TPU backend)

HIDDEN = 64
OUT_DIM = 10
LANE = 128  # lane-dense width for the packed param slab and the padded output


def _round_up8(n):
    return (n + 7) // 8 * 8


def pack_params(params, latent_dim):
    """Pack all layer weights/biases into one [rows, 128] f32 slab.

    Layout (row offsets are 8-aligned, lanes zero-padded to 128):
      w1: [latent_dim, 64]   b1: [1, 64]
      w2: [64, 64]           b2: [1, 64]
      w3: [64, 64]           b3: [1, 64]
      w4: [64, 128]          b4: [1, 128]   (cols 10..127 are zero)
    """
    segs = [("w1", latent_dim), ("b1", 1),
            ("w2", HIDDEN), ("b2", 1),
            ("w3", HIDDEN), ("b3", 1),
            ("w4", HIDDEN), ("b4", 1)]
    offs, rows = {}, 0
    for name, n in segs:
        offs[name] = rows
        rows += _round_up8(n)

    slab = jnp.zeros((rows, LANE), jnp.float32)
    for name, _ in segs:
        arr = params[name]
        r, c = arr.shape
        slab = slab.at[offs[name]:offs[name] + r, :c].set(arr)
    return slab, offs


def label_decoder_kernel(z_ref, p_ref, out_ref, *, offs, latent_dim):
    def seg(name, rows, cols):
        o = offs[name]
        return p_ref[o:o + rows, :cols]          # static slice of the VMEM slab

    z = z_ref[...]                               # [B, latent_dim]

    # h = relu(z @ W1 + b1)
    h = jnp.dot(z, seg("w1", latent_dim, HIDDEN), preferred_element_type=jnp.float32)
    h = jnp.maximum(h + seg("b1", 1, HIDDEN), 0.0)
    # h = relu(h @ W2 + b2)
    h = jnp.dot(h, seg("w2", HIDDEN, HIDDEN), preferred_element_type=jnp.float32)
    h = jnp.maximum(h + seg("b2", 1, HIDDEN), 0.0)
    # h = relu(h @ W3 + b3)
    h = jnp.dot(h, seg("w3", HIDDEN, HIDDEN), preferred_element_type=jnp.float32)
    h = jnp.maximum(h + seg("b3", 1, HIDDEN), 0.0)
    # logits (lane-padded to 128; padded weight/bias columns are zero)
    logits = jnp.dot(h, seg("w4", HIDDEN, LANE), preferred_element_type=jnp.float32)
    logits = logits + seg("b4", 1, LANE)

    out_ref[...] = logits.astype(out_ref.dtype)  # [B, 128] unmasked lane-dense store


def label_decoder_forward(z, param_slab, offs):
    """z: [B, latent_dim] f32. Returns logits [B, 10]."""
    B, latent_dim = z.shape

    def full_spec(shape):
        return pl.BlockSpec(shape, lambda: tuple(0 for _ in shape))

    kernel = functools.partial(label_decoder_kernel, offs=offs, latent_dim=latent_dim)

    out = pl.pallas_call(
        kernel,
        out_shape=jax.ShapeDtypeStruct((B, LANE), jnp.float32),
        grid=(),
        in_specs=[full_spec(z.shape), full_spec(param_slab.shape)],
        out_specs=full_spec((B, LANE)),
    )(z, param_slab)
    return out[:, :OUT_DIM]   # drop the zero-padded lanes (free slice in XLA)


def init_params(key, latent_dim):
    """Synthetic PyTorch-style params. Weights stored transposed [in, out]."""
    ks = jax.random.split(key, 8)

    def linear(kw, kb, fan_in, fan_out):
        bound = 1.0 / jnp.sqrt(jnp.float32(fan_in))
        w = jax.random.uniform(kw, (fan_in, fan_out), jnp.float32, -bound, bound)
        b = jax.random.uniform(kb, (1, fan_out), jnp.float32, -bound, bound)
        return w, b

    w1, b1 = linear(ks[0], ks[1], latent_dim, HIDDEN)
    w2, b2 = linear(ks[2], ks[3], HIDDEN, HIDDEN)
    w3, b3 = linear(ks[4], ks[5], HIDDEN, HIDDEN)
    w4, b4 = linear(ks[6], ks[7], HIDDEN, OUT_DIM)
    return dict(w1=w1, b1=b1, w2=w2, b2=b2, w3=w3, b3=b3, w4=w4, b4=b4)


def reference_forward(z, p):
    h = jnp.maximum(z @ p["w1"] + p["b1"], 0.0)
    h = jnp.maximum(h @ p["w2"] + p["b2"], 0.0)
    h = jnp.maximum(h @ p["w3"] + p["b3"], 0.0)
    return h @ p["w4"] + p["b4"]


if __name__ == "__main__":
    key = jax.random.PRNGKey(0)
    k_z, k_p = jax.random.split(key)

    batch, latent_dim = 8, 32
    z = jax.random.normal(k_z, (batch, latent_dim), jnp.float32)

    params = init_params(k_p, latent_dim)
    param_slab, offs = pack_params(params, latent_dim)   # pack once, reuse per call

    logits = label_decoder_forward(z, param_slab, offs)
    jax.block_until_ready(logits)

    logits_ref = reference_forward(z, params)
    assert logits.shape == (batch, OUT_DIM)
    assert jnp.allclose(logits, logits_ref, atol=1e-5, rtol=1e-5)

    print("KERNEL_OK")
</pallas_src>

<mosaic_0001>
module attributes {stable_mosaic.version = 11 : i64} {
  func.func @label_decoder_kernel(%arg0: memref<8x32xf32, #tpu.memory_space<vmem>>, %arg1: memref<256x128xf32, #tpu.memory_space<vmem>>, %arg2: memref<8x128xf32, #tpu.memory_space<vmem>>) attributes {dimension_semantics = [], scalar_prefetch = 0 : i64, scratch_operands = 0 : i64, tpu.core_type = #tpu.core_type<tc>} {
    %c0 = arith.constant 0 : index
    %c0_0 = arith.constant 0 : index
    %0 = vector.load %arg0[%c0, %c0_0] : memref<8x32xf32, #tpu.memory_space<vmem>>, vector<8x32xf32>
    %c0_1 = arith.constant 0 : index
    %c0_2 = arith.constant 0 : index
    %1 = vector.load %arg1[%c0_1, %c0_2] : memref<256x128xf32, #tpu.memory_space<vmem>>, vector<32x64xf32>
    %cst = arith.constant dense<0.000000e+00> : vector<8x64xf32>
    %2 = tpu.matmul %0, %1, %cst {dimension_numbers = #tpu.dot_dimension_numbers<[1], [0], [0], [1], [0, 0, 1, 1], [], []>} : vector<8x32xf32>, vector<32x64xf32>, vector<8x64xf32> -> vector<8x64xf32>
    %c32 = arith.constant 32 : index
    %c0_3 = arith.constant 0 : index
    %3 = vector.load %arg1[%c32, %c0_3] : memref<256x128xf32, #tpu.memory_space<vmem>>, vector<1x64xf32>
    %4 = vector.broadcast %3 : vector<1x64xf32> to vector<8x64xf32>
    %5 = arith.addf %2, %4 : vector<8x64xf32>
    %cst_4 = arith.constant 0.000000e+00 : f32
    %6 = vector.broadcast %cst_4 : f32 to vector<8x64xf32>
    %7 = arith.maximumf %5, %6 : vector<8x64xf32>
    %c40 = arith.constant 40 : index
    %c0_5 = arith.constant 0 : index
    %8 = vector.load %arg1[%c40, %c0_5] : memref<256x128xf32, #tpu.memory_space<vmem>>, vector<64x64xf32>
    %cst_6 = arith.constant dense<0.000000e+00> : vector<8x64xf32>
    %9 = tpu.matmul %7, %8, %cst_6 {dimension_numbers = #tpu.dot_dimension_numbers<[1], [0], [0], [1], [0, 0, 1, 1], [], []>} : vector<8x64xf32>, vector<64x64xf32>, vector<8x64xf32> -> vector<8x64xf32>
    %c104 = arith.constant 104 : index
    %c0_7 = arith.constant 0 : index
    %10 = vector.load %arg1[%c104, %c0_7] : memref<256x128xf32, #tpu.memory_space<vmem>>, vector<1x64xf32>
    %11 = vector.broadcast %10 : vector<1x64xf32> to vector<8x64xf32>
    %12 = arith.addf %9, %11 : vector<8x64xf32>
    %cst_8 = arith.constant 0.000000e+00 : f32
    %13 = vector.broadcast %cst_8 : f32 to vector<8x64xf32>
    %14 = arith.maximumf %12, %13 : vector<8x64xf32>
    %c112 = arith.constant 112 : index
    %c0_9 = arith.constant 0 : index
    %15 = vector.load %arg1[%c112, %c0_9] : memref<256x128xf32, #tpu.memory_space<vmem>>, vector<64x64xf32>
    %cst_10 = arith.constant dense<0.000000e+00> : vector<8x64xf32>
    %16 = tpu.matmul %14, %15, %cst_10 {dimension_numbers = #tpu.dot_dimension_numbers<[1], [0], [0], [1], [0, 0, 1, 1], [], []>} : vector<8x64xf32>, vector<64x64xf32>, vector<8x64xf32> -> vector<8x64xf32>
    %c176 = arith.constant 176 : index
    %c0_11 = arith.constant 0 : index
    %17 = vector.load %arg1[%c176, %c0_11] : memref<256x128xf32, #tpu.memory_space<vmem>>, vector<1x64xf32>
    %18 = vector.broadcast %17 : vector<1x64xf32> to vector<8x64xf32>
    %19 = arith.addf %16, %18 : vector<8x64xf32>
    %cst_12 = arith.constant 0.000000e+00 : f32
    %20 = vector.broadcast %cst_12 : f32 to vector<8x64xf32>
    %21 = arith.maximumf %19, %20 : vector<8x64xf32>
    %c184 = arith.constant 184 : index
    %c0_13 = arith.constant 0 : index
    %22 = vector.load %arg1[%c184, %c0_13] : memref<256x128xf32, #tpu.memory_space<vmem>>, vector<64x128xf32>
    %cst_14 = arith.constant dense<0.000000e+00> : vector<8x128xf32>
    %23 = tpu.matmul %21, %22, %cst_14 {dimension_numbers = #tpu.dot_dimension_numbers<[1], [0], [0], [1], [0, 0, 1, 1], [], []>} : vector<8x64xf32>, vector<64x128xf32>, vector<8x128xf32> -> vector<8x128xf32>
    %c248 = arith.constant 248 : index
    %c0_15 = arith.constant 0 : index
    %24 = vector.load %arg1[%c248, %c0_15] : memref<256x128xf32, #tpu.memory_space<vmem>>, vector<1x128xf32>
    %25 = vector.broadcast %24 : vector<1x128xf32> to vector<8x128xf32>
    %26 = arith.addf %23, %25 : vector<8x128xf32>
    %c0_16 = arith.constant 0 : index
    %c0_17 = arith.constant 0 : index
    %27 = vector.load %arg2[%c0_16, %c0_17] : memref<8x128xf32, #tpu.memory_space<vmem>>, vector<8x128xf32>
    tpu.vector_store %arg2[%c0_16, %c0_17], %26 {strides = array<i32>} : memref<8x128xf32, #tpu.memory_space<vmem>>, vector<8x128xf32>,
    return
  }
}

</mosaic_0001>

<bundles_post_ra>
// kernel: tpu_custom_call.1
= control target key start
LH: loop header
LB: loop body
LE: loop exit
PB: predicated region body
PF: predicated region fallthrough
CT: control target
= control target key end

     0   :  { %7 = vsyncpa [#allocation3], 0  ;;  %s652_s0 = inlined_call_operand.hbm [shape: f32[8,32], index: 0, kind: input, shape index: {}]   ;;  %s653_s1 = inlined_call_operand.hbm [shape: f32[256,128], index: 1, kind: input, shape index: {}]   ;;  %s654_s2 = inlined_call_operand.hbm [shape: f32[8,128], index: 2, kind: output, shape index: {}]  }
   0x1   :  { %8 = vsyncpa [#allocation6], 0 }
   0x2   :  { %9 = vsyncpa [#allocation4], 0  ;;  %s582_s9 = smov [#allocation2]   ;;  %s583_s11 = smov [#allocation5]  }
   0x3   :  { %s16_s10 = sshll.u32 %s582_s9, 4  ;;  %s25_s12 = sshll.u32 %s583_s11, 4  ;;  %s17_s10 = int_to_ptr.vmem [resolvable:$true] %s16_s10  ;;  %s26_s12 = int_to_ptr.vmem [resolvable:$true] %s25_s12 }
   0x4   :  { %s524_s13 = scalar_lea.vmem %s17_s10, 128  ;;  %p529_p1 = scmp.lt.s32.totalorder %s17_s10, %s17_s10 }
   0x5   :  { %p525_p0 = scmp.ne.s32.totalorder %s17_s10, %s524_s13  ;;  %p530_p2 = scmp.lt.s32.totalorder %s524_s13, %s524_s13 }
   0x7   :  { %p531_p3 = por %p530_p2, %p529_p1 }
   0x9   :  { %p532_p4 = pnand %p531_p3, %p525_p0 }
   0xb   :  { %535 = shalt.err (!%p532_p4)
}
   0xc   :  { %19 = dma.hbm_to_vmem [thread:$0]  %s652_s0, 128, %s17_s10, [#allocation3]  }
   0xd   :  { %s544_s16 = scalar_lea.vmem %s26_s12, 4096  ;;  %p549_p6 = scmp.lt.s32.totalorder %s26_s12, %s26_s12 }
   0xe   :  { %p545_p5 = scmp.ne.s32.totalorder %s26_s12, %s544_s16  ;;  %p550_p7 = scmp.lt.s32.totalorder %s544_s16, %s544_s16 }
  0x10   :  { %p551_p8 = por %p550_p7, %p549_p6 }
  0x12   :  { %p552_p9 = pnand %p551_p8, %p545_p5 }
  0x14   :  { %555 = shalt.err (!%p552_p9)
}
  0x15   :  { %s584_s17 = smov 128   ;;  %s585_s18 = smov 8  }
  0x16   :  { %31 = dma.hbm_to_vmem [thread:$0]  %s653_s1, 4096, %s26_s12, [#allocation6], %s584_s17, %s584_s17, %s585_s18  }
  0x17   :  { %576 = dma.done.wait [#allocation3], 128  }
  0x18   :  { %577 = vsyncadd [#allocation3], 4294967168 }
  0x19   :  { %578 = dma.done.wait [#allocation6], 4096  }
  0x1a   :  { %579 = vsyncadd [#allocation6], 4294963200  ;;  %v586_v0 = vmov 0.0   ;;  %vm587_vm0 = vmmov 0   ;;  %v42_v1 = vld [vmem:[#allocation5 + $0x18] sm:$0xff]  ;;  %v41_v2 = vld [vmem:[#allocation5 + $0x10] sm:$0xff] }
  0x1b   :  { %441 = vmatprep.subr.mxu0 %v586_v0  ;;  %449 = vmatprep.mubr.msk.f32.mxu0 %vm587_vm0, %v586_v0  ;;  %v130_v3 = vld [vmem:[#allocation5 + $0x60] sm:$0xff]  ;;  %v40_v4 = vld [vmem:[#allocation5 + $0x8] sm:$0xff]  ;;  %v129_v5 = vld [vmem:[#allocation5 + $0x58] sm:$0xff]  ;;  %vm48_vm1 = vcmask 261120   ;;  %vm136_vm2 = vcmask 523264   ;;  %s588_s0 = smov [#allocation7]  }
  0x1c   :  { %452 = vmatprep.subr.mxu1 %v586_v0  ;;  %468 = vmatprep.mubr.msk.f32.mxu1 %vm587_vm0, %v586_v0  ;;  %v128_v6 = vld [vmem:[#allocation5 + $0x50] sm:$0xff]  ;;  %v39_v7 = vld [vmem:[#allocation5] sm:$0xff]  ;;  %v38_v8 = vld [vmem:[#allocation2] sm:$0xff]  ;;  %s391_s1 = sshll.u32 %s588_s0, 4  ;;  %s392_s1 = int_to_ptr.vmem [resolvable:$true] %s391_s1 }
  0x1d   :  { %442 = vmatpush3.msra.mxu0 %v42_v1  ;;  %453 = vmatpush3.msra.mxu1 %v130_v3  ;;  %v127_v9 = vld [vmem:[#allocation5 + $0x48] sm:$0xff]  ;;  %v126_v10 = vld [vmem:[#allocation5 + $0x40] sm:$0xff]  ;;  %v125_v11 = vld [vmem:[#allocation5 + $0x38] sm:$0xff]  ;;  %s556_s21 = scalar_lea.vmem %s392_s1, 128  ;;  %p561_p11 = scmp.lt.s32.totalorder %s392_s1, %s392_s1 }
  0x1e   :  { %443 = vmatprep.subr.mxu0 %v586_v0  ;;  %454 = vmatprep.subr.mxu1 %v586_v0  ;;  %v124_v12 = vld [vmem:[#allocation5 + $0x30] sm:$0xff]  ;;  %v123_v13 = vld [vmem:[#allocation5 + $0x28] sm:$0xff]  ;;  %v217_v15 = vld [vmem:[#allocation5 + $0xa0] sm:$0xff]  ;;  %p557_p10 = scmp.ne.s32.totalorder %s392_s1, %s556_s21  ;;  %p562_p12 = scmp.lt.s32.totalorder %s556_s21, %s556_s21 }
  0x1f   :  { %444 = vmatpush3.msra.mxu0 %v41_v2  ;;  %455 = vmatpush3.msra.mxu1 %v129_v5  ;;  %v218_v14 = vld [vmem:[#allocation5 + $0xa8] sm:$0xff]  ;;  %v216_v16 = vld [vmem:[#allocation5 + $0x98] sm:$0xff]  ;;  %v215_v17 = vld [vmem:[#allocation5 + $0x90] sm:$0xff] }
  0x20   :  { %445 = vmatprep.subr.mxu0 %v586_v0  ;;  %456 = vmatprep.subr.mxu1 %v586_v0  ;;  %v214_v18 = vld [vmem:[#allocation5 + $0x88] sm:$0xff]  ;;  %v401_v19 = vld [vmem:[#allocation5 + $0x20] ss:$0 sm:$0xff]  ;;  %v212_v25 = vld [vmem:[#allocation5 + $0x78] sm:$0xff]  ;;  %p563_p13 = por %p562_p12, %p561_p11 }
  0x21   :  { %446 = vmatpush3.msra.mxu0 %v40_v4  ;;  %457 = vmatpush3.msra.mxu1 %v128_v6  ;;  %v213_v24 = vld [vmem:[#allocation5 + $0x80] sm:$0xff]  ;;  %v211_v26 = vld [vmem:[#allocation5 + $0x70] sm:$0xff]  ;;  %v304_v28 = vld [vmem:[#allocation5 + $0xe8] sm:$0xff] }
  0x22   :  { %447 = vmatprep.subr.mxu0 %v586_v0  ;;  %458 = vmatprep.subr.mxu1 %v586_v0  ;;  %v305_v27 = vld [vmem:[#allocation5 + $0xf0] sm:$0xff]  ;;  %v303_v29 = vld [vmem:[#allocation5 + $0xe0] sm:$0xff]  ;;  %v302_v30 = vld [vmem:[#allocation5 + $0xd8] sm:$0xff]  ;;  %p564_p0 = pnand %p563_p13, %p557_p10 }
  0x23   :  { %448 = vmatpush3.msra.mxu0 %v39_v7  ;;  %459 = vmatpush3.msra.mxu1 %v127_v9  ;;  %v301_v31 = vld [vmem:[#allocation5 + $0xd0] sm:$0xff]  ;;  %v403_v32 = vld [vmem:[#allocation5 + $0x68] ss:$0 sm:$0xff]  ;;  %v299_v38 = vld [vmem:[#allocation5 + $0xc0] sm:$0xff] }
  0x24   :  { %450 = vmatmul.mubr.msk.f32.vlgmr.msra.gmra.mxu0 %vm48_vm1, %v38_v8  ;;  %460 = vmatprep.subr.mxu1 %v586_v0  ;;  %v300_v37 = vld [vmem:[#allocation5 + $0xc8] sm:$0xff]  ;;  %v298_v39 = vld [vmem:[#allocation5 + $0xb8] sm:$0xff]  ;;  %v405_v40 = vld [vmem:[#allocation5 + $0xb0] ss:$0 sm:$0xff] }
  0x25   :  { %471 = vmatprep.subr.mxu0 %v586_v0  ;;  %461 = vmatpush3.msra.mxu1 %v126_v10  ;;  %v407_v45 = vld [vmem:[#allocation5 + $0xf8] ss:$0 sm:$0xff] }
  0x26   :  { %487 = vmatprep.mubr.msk.f32.mxu0 %vm587_vm0, %v586_v0  ;;  %462 = vmatprep.subr.mxu1 %v586_v0 }
  0x27   :  { %463 = vmatpush3.msra.mxu1 %v125_v11  ;;  %472 = vmatpush3.msra.mxu0 %v218_v14 }
  0x28   :  { %464 = vmatprep.subr.mxu1 %v586_v0  ;;  %473 = vmatprep.subr.mxu0 %v586_v0 }
  0x29   :  { %465 = vmatpush3.msra.mxu1 %v124_v12  ;;  %474 = vmatpush3.msra.mxu0 %v217_v15 }
  0x2a   :  { %466 = vmatprep.subr.mxu1 %v586_v0  ;;  %475 = vmatprep.subr.mxu0 %v586_v0 }
  0x2b   :  { %467 = vmatpush3.msra.mxu1 %v123_v13  ;;  %476 = vmatpush3.msra.mxu0 %v216_v16 }
  0x2c   :  { %490 = vmatprep.subr.mxu1 %v586_v0  ;;  %477 = vmatprep.subr.mxu0 %v586_v0 }
  0x2d   :  { %478 = vmatpush3.msra.mxu0 %v215_v17 }
  0x2e   :  { %479 = vmatprep.subr.mxu0 %v586_v0 }
  0x2f   :  { %480 = vmatpush3.msra.mxu0 %v214_v18 }
  0x30   :  { %481 = vmatprep.subr.mxu0 %v586_v0 }
  0x31   :  { %482 = vmatpush3.msra.mxu0 %v213_v24 }
  0x32   :  { %483 = vmatprep.subr.mxu0 %v586_v0 }
  0x33   :  { %484 = vmatpush3.msra.mxu0 %v212_v25 }
  0x34   :  { %485 = vmatprep.subr.mxu0 %v586_v0 }
  0x35   :  { %486 = vmatpush3.msra.mxu0 %v211_v26 }
  0xe4   :  { %v118_v20 = vpop.f32.mrf.mxu0 }
  0xe5   :  { %v119_v21 = vadd.f32 %v401_v19, %v118_v20 }
  0xe6   :  { %v451_v22 = vpop.f32.mrf.mxu0 }
  0xe7   :  { %v122_v23 = vmax.f32 %v119_v21, 0.0 }
  0xe9   :  { %469 = vmatmul.mubr.msk.f32.vlgmr.msra.gmra.mxu1 %vm136_vm2, %v122_v23 }
  0xea   :  { %506 = vmatprep.mubr.msk.f32.mxu1 %vm587_vm0, %v586_v0  ;;  %491 = vmatpush3.msra.mxu1 %v305_v27 }
  0xeb   :  { %492 = vmatprep.subr.mxu1 %v586_v0 }
  0xec   :  { %493 = vmatpush3.msra.mxu1 %v304_v28 }
  0xed   :  { %494 = vmatprep.subr.mxu1 %v586_v0 }
  0xee   :  { %495 = vmatpush3.msra.mxu1 %v303_v29 }
  0xef   :  { %496 = vmatprep.subr.mxu1 %v586_v0 }
  0xf0   :  { %497 = vmatpush3.msra.mxu1 %v302_v30 }
  0xf1   :  { %498 = vmatprep.subr.mxu1 %v586_v0 }
  0xf2   :  { %499 = vmatpush3.msra.mxu1 %v301_v31 }
  0xf3   :  { %500 = vmatprep.subr.mxu1 %v586_v0 }
  0xf4   :  { %501 = vmatpush3.msra.mxu1 %v300_v37 }
  0xf5   :  { %502 = vmatprep.subr.mxu1 %v586_v0 }
  0xf6   :  { %503 = vmatpush3.msra.mxu1 %v299_v38 }
  0xf7   :  { %504 = vmatprep.subr.mxu1 %v586_v0 }
  0xf8   :  { %505 = vmatpush3.msra.mxu1 %v298_v39 }
 0x1a9   :  { %v206_v33 = vpop.f32.mrf.mxu1 }
 0x1aa   :  { %v207_v34 = vadd.f32 %v403_v32, %v206_v33 }
 0x1ab   :  { %v470_v35 = vpop.f32.mrf.mxu1 }
 0x1ac   :  { %v210_v36 = vmax.f32 %v207_v34, 0.0 }
 0x1ae   :  { %488 = vmatmul.mubr.msk.f32.vlgmr.msra.gmra.mxu0 %vm136_vm2, %v210_v36 }
 0x26e   :  { %v293_v41 = vpop.f32.mrf.mxu0 }
 0x26f   :  { %v294_v42 = vadd.f32 %v405_v40, %v293_v41 }
 0x270   :  { %v489_v43 = vpop.f32.mrf.mxu0 }
 0x271   :  { %v297_v44 = vmax.f32 %v294_v42, 0.0 }
 0x273   :  { %507 = vmatmul.mubr.msk.f32.vlgmr.msra.gmra.mxu1 %vm136_vm2, %v297_v44 }
 0x333   :  { %v380_v46 = vpop.f32.mrf.mxu1 }
 0x334   :  { %v381_v47 = vadd.f32 %v407_v45, %v380_v46 }
 0x335   :  { %v508_v48 = vpop.f32.mrf.mxu1 }
 0x336   :  { %384 = vst [vmem:[#allocation7] sm:$0xff] %v381_v47 }
 0x337   :  { %567 = shalt.err (!%p564_p0)
}
 0x338   :  { %394 = dma.vmem_to_hbm [thread:$0]  %s392_s1, 128, %s654_s2, [#allocation4]  }
 0x339   :  { %580 = dma.done.wait [#allocation4], 128  }
 0x33a   :  { %581 = vsyncadd [#allocation4], 4294967168 }
 0x33b   :  { %398 = vsyncpa [#allocation3], 1 }
 0x33c   :  { %399 = vsyncpa [#allocation6], 1 }
 0x33d   :  { %400 = vsyncpa [#allocation4], 1 }

</bundles_post_ra>
